<compile_context>
chip_gen: v5e
topology: v5e:2x2
jax: 0.10.0
libtpu: 0.0.40
codegen_flags: <defaults>
</compile_context>

<pallas_src>
import jax
import jax.numpy as jnp
from jax.experimental import pallas as pl
from jax.experimental.pallas import tpu as pltpu


def _copy_kernel(x_ref, o_ref):
    # Identity copy of the current VMEM tile.
    o_ref[...] = x_ref[...]


def _slab_factorization(total, itemsize):
    """Pick a lane-dense (M, lane) factorization of `total` elements with M a
    multiple of the dtype's sublane packing. Returns None if no well-aligned
    factorization exists (caller then skips the copy: reshape is metadata)."""
    sub_mult = max(8, (4 // itemsize) * 8)  # f32 -> 8, bf16 -> 16, int8 -> 32
    for lane in (1024, 512, 256, 128):
        if total % lane == 0 and (total // lane) % sub_mult == 0:
            return total // lane, lane, sub_mult
    return None


def _row_tile(m_rows, lane, itemsize, sub_mult, target_bytes=2 * 1024 * 1024):
    """Largest divisor of m_rows that is a multiple of sub_mult and keeps each
    (rows, lane) block at <= ~target_bytes.  With 2 MiB blocks, the
    double-buffered in+out footprint is ~8 MiB — safely under v5e's 16 MiB
    scoped-VMEM default and far under v7x's 64 MiB physical VMEM."""
    max_rows = max(sub_mult,
                   (target_bytes // (lane * itemsize)) // sub_mult * sub_mult)
    best = sub_mult
    d = sub_mult
    limit = min(m_rows, max_rows)
    while d <= limit:
        if m_rows % d == 0:
            best = d
        d += sub_mult
    return best


def _pallas_identity_copy(x):
    """Identity copy of `x` through a tiled, pipelined Pallas kernel."""
    total = x.size
    itemsize = jnp.dtype(x.dtype).itemsize
    slab = _slab_factorization(total, itemsize)
    if slab is None:
        # No 128-aligned, sublane-full factorization — skip the copy rather
        # than emit a badly shaped / whole-array block. Reshape is metadata.
        return x
    m_rows, lane, sub_mult = slab
    tm = _row_tile(m_rows, lane, itemsize, sub_mult)

    x2d = x.reshape(m_rows, lane)  # metadata only (contiguous row-major)

    out = pl.pallas_call(
        _copy_kernel,
        out_shape=jax.ShapeDtypeStruct((m_rows, lane), x.dtype),
        grid=(m_rows // tm,),
        in_specs=[pl.BlockSpec((tm, lane), lambda i: (i, 0))],
        out_specs=pl.BlockSpec((tm, lane), lambda i: (i, 0)),
        compiler_params=pltpu.CompilerParams(
            dimension_semantics=("parallel",),
            vmem_limit_bytes=16 * 1024 * 1024,
        ),
    )(x2d)
    return out.reshape(x.shape)


class Reshape:
    """JAX/Pallas equivalent of the PyTorch Reshape module."""

    def __init__(self, *args):
        self.shape = tuple(args)

    def __call__(self, x):
        B = x.shape[0]
        # NOTE: for production use, `return x.reshape((B,) + self.shape)` is
        # the right answer (reshape is free); the Pallas copy is kept here as
        # the explicit kernel hot path, tiled per the perf review.
        copied = _pallas_identity_copy(x)
        return copied.reshape((B,) + self.shape)


if __name__ == "__main__":
    key = jax.random.PRNGKey(0)
    # Small NCHW-style input, same as the PyTorch module would see.
    B, C, H, W = 2, 4, 16, 16
    x = jax.random.normal(key, (B, C, H, W), dtype=jnp.float32)

    # Target shape (like Reshape(16, 64)): 16 * 64 == C * H * W == 1024.
    mod = Reshape(16, 64)

    out = mod(x)
    out = jax.block_until_ready(out)

    # Reference semantics of torch .view on a contiguous tensor.
    ref = x.reshape((B, 16, 64))
    assert out.shape == (B, 16, 64), out.shape
    assert out.dtype == x.dtype
    assert bool(jnp.all(out == ref))

    print("KERNEL_OK")
</pallas_src>

<mosaic_0001>
module attributes {stable_mosaic.version = 11 : i64} {
  func.func @_copy_kernel(%arg0: i32, %arg1: memref<8x256xf32, #tpu.memory_space<vmem>>, %arg2: memref<8x256xf32, #tpu.memory_space<vmem>>) attributes {dimension_semantics = [#tpu.dimension_semantics<parallel>], iteration_bounds = array<i64: 1>, scalar_prefetch = 0 : i64, scratch_operands = 0 : i64, tpu.core_type = #tpu.core_type<tc>, window_params = [{transform_indices = @transform_0, window_bounds = array<i64: 8, 256>}, {transform_indices = @transform_1, window_bounds = array<i64: 8, 256>}]} {
    %c0 = arith.constant 0 : index
    %c0_0 = arith.constant 0 : index
    %0 = vector.load %arg1[%c0, %c0_0] : memref<8x256xf32, #tpu.memory_space<vmem>>, vector<8x256xf32>
    %c0_1 = arith.constant 0 : index
    %c0_2 = arith.constant 0 : index
    %1 = vector.load %arg2[%c0_1, %c0_2] : memref<8x256xf32, #tpu.memory_space<vmem>>, vector<8x256xf32>
    tpu.vector_store %arg2[%c0_1, %c0_2], %0 {strides = array<i32>} : memref<8x256xf32, #tpu.memory_space<vmem>>, vector<8x256xf32>,
    return
  }
  func.func @transform_0(%arg0: i32) -> (i32, i32) {
    %c0_i32 = arith.constant 0 : i32
    %c0_i32_0 = arith.constant 0 : i32
    return %arg0, %c0_i32 : i32, i32
  }
  func.func @transform_1(%arg0: i32) -> (i32, i32) {
    %c0_i32 = arith.constant 0 : i32
    %c0_i32_0 = arith.constant 0 : i32
    return %arg0, %c0_i32 : i32, i32
  }
}

</mosaic_0001>

<bundles_post_ra>
// kernel: tpu_custom_call.1
= control target key start
LH: loop header
LB: loop body
LE: loop exit
PB: predicated region body
PF: predicated region fallthrough
CT: control target
= control target key end

     0   :  { %6 = vsyncpa [#allocation3], 0  ;;  %s116_s0 = inlined_call_operand.hbm [shape: f32[8,256], index: 0, kind: input, shape index: {}]   ;;  %s117_s1 = inlined_call_operand.hbm [shape: f32[8,256], index: 1, kind: output, shape index: {}]  }
   0x1   :  { %7 = vsyncpa [#allocation4], 0  ;;  %s13_s8 = sshll.u32 %s116_s0, 4  ;;  %s98_s9 = smov [#allocation2]   ;;  %s14_s8 = int_to_ptr.hbm [resolvable:$true] %s13_s8 }
   0x2   :  { %s15_s10 = sshll.u32 %s98_s9, 4  ;;  %s16_s10 = int_to_ptr.vmem [resolvable:$true] %s15_s10 }
   0x3   :  { %18 = dma.hbm_to_vmem [thread:$0]  %s14_s8, 256, %s16_s10, [#allocation3]  }
   0x4   :  { %94 = dma.done.wait [#allocation3], 256  }
   0x5   :  { %95 = vsyncadd [#allocation3], 4294967040  ;;  %s99_s11 = smov [#allocation5]   ;;  %s34_s15 = sshll.u32 %s117_s1, 4  ;;  %v23_v0 = vld [vmem:[#allocation2] sm:$0xff]  ;;  %v24_v1 = vld [vmem:[#allocation2 + $0x8] sm:$0xff]  ;;  %s35_s15 = int_to_ptr.hbm [resolvable:$true] %s34_s15 }
   0x6   :  { %s32_s12 = sshll.u32 %s99_s11, 4  ;;  %25 = vst [vmem:[#allocation5] sm:$0xff] %v23_v0  ;;  %s33_s12 = int_to_ptr.vmem [resolvable:$true] %s32_s12 }
   0x7   :  { %26 = vst [vmem:[#allocation5 + $0x8] sm:$0xff] %v24_v1 }
   0x8   :  { %37 = dma.vmem_to_hbm [thread:$0]  %s33_s12, 256, %s35_s15, [#allocation4]  }
   0x9   :  { %96 = dma.done.wait [#allocation4], 256  }
   0xa   :  { %97 = vsyncadd [#allocation4], 4294967040 }
   0xb   :  { %42 = vsyncpa [#allocation3], 1 }
   0xc   :  { %43 = vsyncpa [#allocation4], 1 }

</bundles_post_ra>
